<compile_context>
chip_gen: v7x
topology: tpu7x:2x2x1
jax: 0.10.0
libtpu: 0.0.40
codegen_flags: <defaults>
</compile_context>

<pallas_src>
import functools
import math

import jax
import jax.numpy as jnp
from jax import lax
from jax.experimental import pallas as pl
from jax.experimental.pallas import tpu as pltpu


LANES = 128
VMEM_CAP_BYTES = 32 << 20   # scoped-VMEM budget safe on v5e / v6e / v7x


# --------------------------------------------------------------------------
# In-kernel flip helper
# --------------------------------------------------------------------------
def _rev_within_groups(x, group):
    """Reverse every contiguous `group` of lanes along the last axis.

    If `group` equals the full lane width this is a plain lax.rev.  Otherwise
    (folded small-W path, `group` is a power of two dividing 128) it is built
    from log2(group) static XLU rolls + VPU selects: out[j] = x[j XOR (group-1)],
    which is the within-group reversal.  All work is on-register; the kernel
    stays mem-bound.
    """
    ndim = x.ndim
    n = x.shape[-1]
    if group >= n:
        return lax.rev(x, (ndim - 1,))
    lane = lax.broadcasted_iota(jnp.int32, x.shape, ndim - 1)
    s = 1
    while s < group:
        fwd = pltpu.roll(x, n - s, ndim - 1)   # x[..., (j + s) mod n]
        bwd = pltpu.roll(x, s, ndim - 1)       # x[..., (j - s) mod n]
        x = jnp.where((lane & s) == 0, fwd, bwd)
        s *= 2
    return x


# --------------------------------------------------------------------------
# Kernels
# --------------------------------------------------------------------------
def _hflip_fused_kernel(group, img_ref, oth_ref, img_out_ref, oth_out_ref):
    # Flip in native dtype first (cheaper for packed dtypes), then upcast for
    # the denormalize -> round -> normalize math.
    flipped = _rev_within_groups(img_ref[...], group)
    x = flipped.astype(jnp.float32)
    img_out_ref[...] = (jnp.round(x * 255.0) / 255.0).astype(img_out_ref.dtype)
    # Other tensor: pure flip, stays in its own dtype.
    oth_out_ref[...] = _rev_within_groups(oth_ref[...], group)


def _hflip_norm_kernel(group, img_ref, img_out_ref):
    flipped = _rev_within_groups(img_ref[...], group)
    x = flipped.astype(jnp.float32)
    img_out_ref[...] = (jnp.round(x * 255.0) / 255.0).astype(img_out_ref.dtype)


def _hflip_only_kernel(group, x_ref, o_ref):
    o_ref[...] = _rev_within_groups(x_ref[...], group)


# --------------------------------------------------------------------------
# Tiling helpers
# --------------------------------------------------------------------------
def _sublane_pack(dtype):
    """Row rounding for the sublane packing: 8 (f32), 16 (bf16), 32 (int8)."""
    return 8 * max(1, 4 // jnp.dtype(dtype).itemsize)


def _fold_factor(R, W):
    """Rows folded into the lane axis so the block width becomes 128."""
    if W < LANES and LANES % W == 0:
        k = LANES // W
        if R % k == 0:
            return k
    return 1


def _pick_tile_rows(R, row_bytes, pack, *, bufs_per_block, target_bytes):
    """Rows per block: multiple of the sublane packing, sized toward
    `target_bytes` but capped by the scoped-VMEM budget (accounting for
    double-buffered in/out blocks + temps), and capped so the grid has >= 4
    steps (>= 2 per v7x core) whenever blocks can stay >= ~512 KiB."""
    if R <= 2 * pack:
        return R                                    # tiny: one block == whole array
    budget = max(row_bytes * pack,
                 min(target_bytes, VMEM_CAP_BYTES // bufs_per_block))
    tr = max(pack, (budget // max(1, row_bytes)) // pack * pack)
    total = R * row_bytes
    if total >= 4 * (512 << 10):
        tr = min(tr, max(pack, (R // 4) // pack * pack))   # >= 4 grid steps
    elif total >= 2 * (256 << 10):
        tr = min(tr, max(pack, (R // 2) // pack * pack))   # >= 2 grid steps
    return min(tr, R)


def _compiler_params():
    return pltpu.CompilerParams(dimension_semantics=("parallel",),
                                vmem_limit_bytes=VMEM_CAP_BYTES)


def _flip_only(x, target_block_bytes):
    """Pure horizontal flip of the last axis (other_tensor fallback path)."""
    W = x.shape[-1]
    R = math.prod(x.shape[:-1]) if x.ndim > 1 else 1
    k = _fold_factor(R, W)
    Rf, Wf = R // k, k * W
    x2d = x.reshape(Rf, Wf)
    pack = _sublane_pack(x.dtype)
    tr = _pick_tile_rows(Rf, Wf * jnp.dtype(x.dtype).itemsize, pack,
                         bufs_per_block=6, target_bytes=target_block_bytes)
    spec = pl.BlockSpec((tr, Wf), lambda i: (i, 0))
    out = pl.pallas_call(
        functools.partial(_hflip_only_kernel, W),
        out_shape=jax.ShapeDtypeStruct((Rf, Wf), x.dtype),
        grid=(pl.cdiv(Rf, tr),),
        in_specs=[spec],
        out_specs=spec,
        compiler_params=_compiler_params(),
    )(x2d)
    return out.reshape(x.shape)


# --------------------------------------------------------------------------
# Forward wrapper (matches HFlip.forward semantics, p=1.0 -> always flip)
# --------------------------------------------------------------------------
def hflip_forward(input_tensor, other_tensor=None, *, target_block_bytes=2 << 20):
    """out = round(flip_W(x * 255)) / 255 ; and flip_W(other) if given."""
    N, C, H, W = input_tensor.shape
    R = N * C * H
    k = _fold_factor(R, W)
    Rf, Wf = R // k, k * W                       # lane-dense (128-wide) view when folded
    x2d = input_tensor.reshape(Rf, Wf)

    fused = (other_tensor is not None
             and tuple(other_tensor.shape) == tuple(input_tensor.shape))

    if fused:
        o2d = other_tensor.reshape(Rf, Wf)
        itemsize = max(jnp.dtype(input_tensor.dtype).itemsize,
                       jnp.dtype(other_tensor.dtype).itemsize)
        pack = max(_sublane_pack(input_tensor.dtype),
                   _sublane_pack(other_tensor.dtype))
        # 2 inputs + 2 outputs, double-buffered, plus f32 temps ~= 10x block bytes.
        tr = _pick_tile_rows(Rf, Wf * itemsize, pack,
                             bufs_per_block=10, target_bytes=target_block_bytes)
        spec = pl.BlockSpec((tr, Wf), lambda i: (i, 0))
        img_out, oth_out = pl.pallas_call(
            functools.partial(_hflip_fused_kernel, W),
            out_shape=(jax.ShapeDtypeStruct((Rf, Wf), input_tensor.dtype),
                       jax.ShapeDtypeStruct((Rf, Wf), other_tensor.dtype)),
            grid=(pl.cdiv(Rf, tr),),
            in_specs=[spec, spec],
            out_specs=(spec, spec),
            compiler_params=_compiler_params(),
        )(x2d, o2d)
        return (img_out.reshape(N, C, H, W),
                oth_out.reshape(other_tensor.shape))

    pack = _sublane_pack(input_tensor.dtype)
    tr = _pick_tile_rows(Rf, Wf * jnp.dtype(input_tensor.dtype).itemsize, pack,
                         bufs_per_block=6, target_bytes=target_block_bytes)
    spec = pl.BlockSpec((tr, Wf), lambda i: (i, 0))
    out = pl.pallas_call(
        functools.partial(_hflip_norm_kernel, W),
        out_shape=jax.ShapeDtypeStruct((Rf, Wf), input_tensor.dtype),
        grid=(pl.cdiv(Rf, tr),),
        in_specs=[spec],
        out_specs=spec,
        compiler_params=_compiler_params(),
    )(x2d).reshape(N, C, H, W)

    if other_tensor is not None:
        # Shape mismatch fallback: separate flip-only launch.
        return out, _flip_only(other_tensor, target_block_bytes)
    return out


# --------------------------------------------------------------------------
# Test
# --------------------------------------------------------------------------
if __name__ == "__main__":
    key = jax.random.PRNGKey(0)
    k1, k2, k3 = jax.random.split(key, 3)

    # BraTS-like small shapes: batch=2, 4 modalities, 16x16 spatial.
    x = jax.random.uniform(k1, (2, 4, 16, 16), dtype=jnp.float32)    # normalized image
    seg = jax.random.uniform(k2, (2, 4, 16, 16), dtype=jnp.float32)  # mask / other tensor

    # Fused (image + other) path — exercises the folded lane-dense branch.
    out, out_seg = hflip_forward(x, seg)
    out = jax.block_until_ready(out)
    out_seg = jax.block_until_ready(out_seg)

    # Image-only path.
    out_only = jax.block_until_ready(hflip_forward(x))

    # Reference semantics: round(flip_W(x * 255)) / 255 ; flip_W(other)
    ref = jnp.round(jnp.flip(x, axis=-1) * 255.0) / 255.0
    ref_seg = jnp.flip(seg, axis=-1)

    assert out.shape == x.shape and out.dtype == x.dtype
    assert out_seg.shape == seg.shape and out_seg.dtype == seg.dtype
    assert jnp.allclose(out, ref, atol=1e-6), "image path mismatch"
    assert jnp.allclose(out_only, ref, atol=1e-6), "image-only path mismatch"
    assert jnp.allclose(out_seg, ref_seg, atol=1e-6), "other-tensor path mismatch"

    # Non-foldable width (128 % 24 != 0) — exercises the lax.rev branch.
    y = jax.random.uniform(k3, (2, 3, 8, 24), dtype=jnp.float32)
    out_y = jax.block_until_ready(hflip_forward(y))
    ref_y = jnp.round(jnp.flip(y, axis=-1) * 255.0) / 255.0
    assert jnp.allclose(out_y, ref_y, atol=1e-6), "odd-width path mismatch"

    print("KERNEL_OK")
</pallas_src>

<mosaic_0001>
module attributes {stable_mosaic.version = 11 : i64} {
  func.func @_hflip_fused_kernel(%arg0: i32, %arg1: memref<16x128xf32, #tpu.memory_space<vmem>>, %arg2: memref<16x128xf32, #tpu.memory_space<vmem>>, %arg3: memref<16x128xf32, #tpu.memory_space<vmem>>, %arg4: memref<16x128xf32, #tpu.memory_space<vmem>>) attributes {dimension_semantics = [#tpu.dimension_semantics<parallel>], iteration_bounds = array<i64: 1>, scalar_prefetch = 0 : i64, scratch_operands = 0 : i64, tpu.core_type = #tpu.core_type<tc>, window_params = [{transform_indices = @transform_0, window_bounds = array<i64: 16, 128>}, {transform_indices = @transform_1, window_bounds = array<i64: 16, 128>}, {transform_indices = @transform_2, window_bounds = array<i64: 16, 128>}, {transform_indices = @transform_3, window_bounds = array<i64: 16, 128>}]} {
    %c0 = arith.constant 0 : index
    %c0_0 = arith.constant 0 : index
    %0 = vector.load %arg1[%c0, %c0_0] : memref<16x128xf32, #tpu.memory_space<vmem>>, vector<16x128xf32>
    %1 = tpu.iota {dimensions = array<i32: 1>} : vector<16x128xi32>
    %c127_i32 = arith.constant 127 : i32
    %2 = tpu.dynamic_rotate %0 by %c127_i32 dim 1 : vector<16x128xf32>, i32 -> vector<16x128xf32>
    %c1_i32 = arith.constant 1 : i32
    %3 = tpu.dynamic_rotate %0 by %c1_i32 dim 1 : vector<16x128xf32>, i32 -> vector<16x128xf32>
    %c1_i32_1 = arith.constant 1 : i32
    %4 = vector.broadcast %c1_i32_1 : i32 to vector<16x128xi32>
    %5 = arith.andi %1, %4 : vector<16x128xi32>
    %c0_i32 = arith.constant 0 : i32
    %6 = vector.broadcast %c0_i32 : i32 to vector<16x128xi32>
    %7 = arith.cmpi eq, %5, %6 : vector<16x128xi32>
    %8 = arith.select %7, %2, %3 : vector<16x128xi1>, vector<16x128xf32>
    %c126_i32 = arith.constant 126 : i32
    %9 = tpu.dynamic_rotate %8 by %c126_i32 dim 1 : vector<16x128xf32>, i32 -> vector<16x128xf32>
    %c2_i32 = arith.constant 2 : i32
    %10 = tpu.dynamic_rotate %8 by %c2_i32 dim 1 : vector<16x128xf32>, i32 -> vector<16x128xf32>
    %c2_i32_2 = arith.constant 2 : i32
    %11 = vector.broadcast %c2_i32_2 : i32 to vector<16x128xi32>
    %12 = arith.andi %1, %11 : vector<16x128xi32>
    %c0_i32_3 = arith.constant 0 : i32
    %13 = vector.broadcast %c0_i32_3 : i32 to vector<16x128xi32>
    %14 = arith.cmpi eq, %12, %13 : vector<16x128xi32>
    %15 = arith.select %14, %9, %10 : vector<16x128xi1>, vector<16x128xf32>
    %c124_i32 = arith.constant 124 : i32
    %16 = tpu.dynamic_rotate %15 by %c124_i32 dim 1 : vector<16x128xf32>, i32 -> vector<16x128xf32>
    %c4_i32 = arith.constant 4 : i32
    %17 = tpu.dynamic_rotate %15 by %c4_i32 dim 1 : vector<16x128xf32>, i32 -> vector<16x128xf32>
    %c4_i32_4 = arith.constant 4 : i32
    %18 = vector.broadcast %c4_i32_4 : i32 to vector<16x128xi32>
    %19 = arith.andi %1, %18 : vector<16x128xi32>
    %c0_i32_5 = arith.constant 0 : i32
    %20 = vector.broadcast %c0_i32_5 : i32 to vector<16x128xi32>
    %21 = arith.cmpi eq, %19, %20 : vector<16x128xi32>
    %22 = arith.select %21, %16, %17 : vector<16x128xi1>, vector<16x128xf32>
    %c120_i32 = arith.constant 120 : i32
    %23 = tpu.dynamic_rotate %22 by %c120_i32 dim 1 : vector<16x128xf32>, i32 -> vector<16x128xf32>
    %c8_i32 = arith.constant 8 : i32
    %24 = tpu.dynamic_rotate %22 by %c8_i32 dim 1 : vector<16x128xf32>, i32 -> vector<16x128xf32>
    %c8_i32_6 = arith.constant 8 : i32
    %25 = vector.broadcast %c8_i32_6 : i32 to vector<16x128xi32>
    %26 = arith.andi %1, %25 : vector<16x128xi32>
    %c0_i32_7 = arith.constant 0 : i32
    %27 = vector.broadcast %c0_i32_7 : i32 to vector<16x128xi32>
    %28 = arith.cmpi eq, %26, %27 : vector<16x128xi32>
    %29 = arith.select %28, %23, %24 : vector<16x128xi1>, vector<16x128xf32>
    %cst = arith.constant 2.550000e+02 : f32
    %30 = vector.broadcast %cst : f32 to vector<16x128xf32>
    %31 = arith.mulf %29, %30 : vector<16x128xf32>
    %32 = math.roundeven %31 : vector<16x128xf32>
    %cst_8 = arith.constant 2.550000e+02 : f32
    %33 = vector.broadcast %cst_8 : f32 to vector<16x128xf32>
    %34 = arith.divf %32, %33 : vector<16x128xf32>
    %c0_9 = arith.constant 0 : index
    %c0_10 = arith.constant 0 : index
    %35 = vector.load %arg3[%c0_9, %c0_10] : memref<16x128xf32, #tpu.memory_space<vmem>>, vector<16x128xf32>
    tpu.vector_store %arg3[%c0_9, %c0_10], %34 {strides = array<i32>} : memref<16x128xf32, #tpu.memory_space<vmem>>, vector<16x128xf32>,
    %c0_11 = arith.constant 0 : index
    %c0_12 = arith.constant 0 : index
    %36 = vector.load %arg2[%c0_11, %c0_12] : memref<16x128xf32, #tpu.memory_space<vmem>>, vector<16x128xf32>
    %37 = tpu.iota {dimensions = array<i32: 1>} : vector<16x128xi32>
    %c127_i32_13 = arith.constant 127 : i32
    %38 = tpu.dynamic_rotate %36 by %c127_i32_13 dim 1 : vector<16x128xf32>, i32 -> vector<16x128xf32>
    %c1_i32_14 = arith.constant 1 : i32
    %39 = tpu.dynamic_rotate %36 by %c1_i32_14 dim 1 : vector<16x128xf32>, i32 -> vector<16x128xf32>
    %c1_i32_15 = arith.constant 1 : i32
    %40 = vector.broadcast %c1_i32_15 : i32 to vector<16x128xi32>
    %41 = arith.andi %37, %40 : vector<16x128xi32>
    %c0_i32_16 = arith.constant 0 : i32
    %42 = vector.broadcast %c0_i32_16 : i32 to vector<16x128xi32>
    %43 = arith.cmpi eq, %41, %42 : vector<16x128xi32>
    %44 = arith.select %43, %38, %39 : vector<16x128xi1>, vector<16x128xf32>
    %c126_i32_17 = arith.constant 126 : i32
    %45 = tpu.dynamic_rotate %44 by %c126_i32_17 dim 1 : vector<16x128xf32>, i32 -> vector<16x128xf32>
    %c2_i32_18 = arith.constant 2 : i32
    %46 = tpu.dynamic_rotate %44 by %c2_i32_18 dim 1 : vector<16x128xf32>, i32 -> vector<16x128xf32>
    %c2_i32_19 = arith.constant 2 : i32
    %47 = vector.broadcast %c2_i32_19 : i32 to vector<16x128xi32>
    %48 = arith.andi %37, %47 : vector<16x128xi32>
    %c0_i32_20 = arith.constant 0 : i32
    %49 = vector.broadcast %c0_i32_20 : i32 to vector<16x128xi32>
    %50 = arith.cmpi eq, %48, %49 : vector<16x128xi32>
    %51 = arith.select %50, %45, %46 : vector<16x128xi1>, vector<16x128xf32>
    %c124_i32_21 = arith.constant 124 : i32
    %52 = tpu.dynamic_rotate %51 by %c124_i32_21 dim 1 : vector<16x128xf32>, i32 -> vector<16x128xf32>
    %c4_i32_22 = arith.constant 4 : i32
    %53 = tpu.dynamic_rotate %51 by %c4_i32_22 dim 1 : vector<16x128xf32>, i32 -> vector<16x128xf32>
    %c4_i32_23 = arith.constant 4 : i32
    %54 = vector.broadcast %c4_i32_23 : i32 to vector<16x128xi32>
    %55 = arith.andi %37, %54 : vector<16x128xi32>
    %c0_i32_24 = arith.constant 0 : i32
    %56 = vector.broadcast %c0_i32_24 : i32 to vector<16x128xi32>
    %57 = arith.cmpi eq, %55, %56 : vector<16x128xi32>
    %58 = arith.select %57, %52, %53 : vector<16x128xi1>, vector<16x128xf32>
    %c120_i32_25 = arith.constant 120 : i32
    %59 = tpu.dynamic_rotate %58 by %c120_i32_25 dim 1 : vector<16x128xf32>, i32 -> vector<16x128xf32>
    %c8_i32_26 = arith.constant 8 : i32
    %60 = tpu.dynamic_rotate %58 by %c8_i32_26 dim 1 : vector<16x128xf32>, i32 -> vector<16x128xf32>
    %c8_i32_27 = arith.constant 8 : i32
    %61 = vector.broadcast %c8_i32_27 : i32 to vector<16x128xi32>
    %62 = arith.andi %37, %61 : vector<16x128xi32>
    %c0_i32_28 = arith.constant 0 : i32
    %63 = vector.broadcast %c0_i32_28 : i32 to vector<16x128xi32>
    %64 = arith.cmpi eq, %62, %63 : vector<16x128xi32>
    %65 = arith.select %64, %59, %60 : vector<16x128xi1>, vector<16x128xf32>
    %c0_29 = arith.constant 0 : index
    %c0_30 = arith.constant 0 : index
    %66 = vector.load %arg4[%c0_29, %c0_30] : memref<16x128xf32, #tpu.memory_space<vmem>>, vector<16x128xf32>
    tpu.vector_store %arg4[%c0_29, %c0_30], %65 {strides = array<i32>} : memref<16x128xf32, #tpu.memory_space<vmem>>, vector<16x128xf32>,
    return
  }
  func.func @transform_0(%arg0: i32) -> (i32, i32) {
    %c0_i32 = arith.constant 0 : i32
    %c0_i32_0 = arith.constant 0 : i32
    return %arg0, %c0_i32 : i32, i32
  }
  func.func @transform_1(%arg0: i32) -> (i32, i32) {
    %c0_i32 = arith.constant 0 : i32
    %c0_i32_0 = arith.constant 0 : i32
    return %arg0, %c0_i32 : i32, i32
  }
  func.func @transform_2(%arg0: i32) -> (i32, i32) {
    %c0_i32 = arith.constant 0 : i32
    %c0_i32_0 = arith.constant 0 : i32
    return %arg0, %c0_i32 : i32, i32
  }
  func.func @transform_3(%arg0: i32) -> (i32, i32) {
    %c0_i32 = arith.constant 0 : i32
    %c0_i32_0 = arith.constant 0 : i32
    return %arg0, %c0_i32 : i32, i32
  }
}

</mosaic_0001>

<bundles_post_ra>
// kernel: tpu_custom_call.1
= control target key start
LH: loop header
LB: loop body
LE: loop exit
PB: predicated region body
PF: predicated region fallthrough
CT: control target
= control target key end

     0   :  { %9 = vsyncpa [#allocation3], 0  ;;  %s451_s0 = inlined_call_operand.hbm [shape: f32[16,128], index: 0, kind: input, shape index: {}]   ;;  %s452_s1 = inlined_call_operand.hbm [shape: f32[16,128], index: 1, kind: input, shape index: {}]   ;;  %s453_s2 = inlined_call_operand.hbm [shape: f32[16,128], index: 2, kind: output, shape index: {0}]   ;;  %s454_s3 = inlined_call_operand.hbm [shape: f32[16,128], index: 3, kind: output, shape index: {1}]  }
   0x1   :  { %10 = vsyncpa [#allocation6], 0 }
   0x2   :  { %11 = vsyncpa [#allocation4], 0 }
   0x3   :  { %12 = vsyncpa [#allocation9], 0  ;;  %s293_s12 = smov [#allocation2]   ;;  %s197_s16 = scalar_lea.hbm %s451_s0, 256 }
   0x4   :  { %s18_s13 = sshll.u32 %s293_s12, 4  ;;  %p198_p0 = scmp.ne.s32.totalorder %s451_s0, %s197_s16  ;;  %s19_s13 = int_to_ptr.vmem [resolvable:$true] %s18_s13 }
   0x5   :  { %p201_p1 = scmp.lt.u32.totalorder %s197_s16, %s451_s0 }
   0x7   :  { %p203_p2 = pnand %p201_p1, %p198_p0 }
   0x9   :  { %206 = shalt.err (!%p203_p2)
}
   0xa   :  { %s207_s21 = scalar_lea.vmem %s19_s13, 256  ;;  %p212_p4 = scmp.lt.s32.totalorder %s19_s13, %s19_s13 }
   0xb   :  { %p208_p3 = scmp.ne.s32.totalorder %s19_s13, %s207_s21  ;;  %p213_p5 = scmp.lt.s32.totalorder %s207_s21, %s207_s21 }
   0xd   :  { %p214_p6 = por %p213_p5, %p212_p4 }
   0xf   :  { %p215_p7 = pnand %p214_p6, %p208_p3 }
  0x11   :  { %218 = shalt.err (!%p215_p7)
}
  0x12   :  { %s294_s22 = smov 128   ;;  %s295_s23 = smov 8  }
  0x13   :  { %24 = dma.hbm_to_vmem [thread:$0]  %s451_s0, 256, %s19_s13, [#allocation3], %s294_s22, %s294_s22, %s295_s23  }
  0x14   :  { %s296_s26 = smov [#allocation5]   ;;  %s219_s30 = scalar_lea.hbm %s452_s1, 256 }
  0x15   :  { %s30_s27 = sshll.u32 %s296_s26, 4  ;;  %p220_p8 = scmp.ne.s32.totalorder %s452_s1, %s219_s30  ;;  %s31_s27 = int_to_ptr.vmem [resolvable:$true] %s30_s27 }
  0x16   :  { %p223_p9 = scmp.lt.u32.totalorder %s219_s30, %s452_s1 }
  0x18   :  { %p225_p10 = pnand %p223_p9, %p220_p8 }
  0x1a   :  { %228 = shalt.err (!%p225_p10)
}
  0x1b   :  { %s229_s8 = scalar_lea.vmem %s31_s27, 256  ;;  %p234_p12 = scmp.lt.s32.totalorder %s31_s27, %s31_s27 }
  0x1c   :  { %p230_p11 = scmp.ne.s32.totalorder %s31_s27, %s229_s8  ;;  %p235_p13 = scmp.lt.s32.totalorder %s229_s8, %s229_s8 }
  0x1e   :  { %p236_p0 = por %p235_p13, %p234_p12 }
  0x20   :  { %p237_p1 = pnand %p236_p0, %p230_p11 }
  0x22   :  { %240 = shalt.err (!%p237_p1)
}
  0x23   :  { %36 = dma.hbm_to_vmem [thread:$0]  %s452_s1, 256, %s31_s27, [#allocation6], %s294_s22, %s294_s22, %s295_s23  }
  0x24   :  { %285 = dma.done.wait [#allocation3], 256  }
  0x25   :  { %286 = vsyncadd [#allocation3], 4294967040 }
  0x26   :  { %287 = dma.done.wait [#allocation6], 256  }
  0x27   :  { %288 = vsyncadd [#allocation6], 4294967040  ;;  %v43_v0 = vld [vmem:[#allocation2] sm:$0xff]  ;;  %s297_s10 = smov 1   ;;  %s298_s11 = smov 127   ;;  %v44_v1 = vld [vmem:[#allocation2 + $0x8] sm:$0xff]  ;;  %v45_v4 = vlaneseq }
  0x28   :  { %51 = vrot.lane.b32.xlu1 %v43_v0, %s297_s10  ;;  %47 = vrot.lane.b32.xlu0 %v43_v0, %s298_s11  ;;  %v105_v2 = vld [vmem:[#allocation5 + $0x8] sm:$0xff]  ;;  %v104_v3 = vld [vmem:[#allocation5] sm:$0xff]  ;;  %s299_s1 = smov 126   ;;  %s300_s12 = smov 2  }
  0x29   :  { %v356_v5 = vand.u32 127, %v45_v4  ;;  %s301_s13 = smov 124   ;;  %s302_s14 = smov 4  }
  0x2a   :  { %s303_s15 = smov 120   ;;  %s304_s16 = smov [#allocation7]  }
  0x2b   :  { %v55_v6 = vand.u32 1, %v356_v5  ;;  %v67_v20 = vand.u32 2, %v356_v5  ;;  %v79_v34 = vand.u32 4, %v356_v5  ;;  %v91_v48 = vand.u32 8, %v356_v5  ;;  %s153_s17 = sshll.u32 %s304_s16, 4  ;;  %s305_s18 = smov [#allocation8]   ;;  %s154_s17 = int_to_ptr.vmem [resolvable:$true] %s153_s17 }
  0x2c   :  { %53 = vrot.lane.b32.xlu1 %v44_v1, %s297_s10  ;;  %49 = vrot.lane.b32.xlu0 %v44_v1, %s298_s11  ;;  %s165_s19 = sshll.u32 %s305_s18, 4  ;;  %s241_s20 = scalar_lea.vmem %s154_s17, 256  ;;  %s410_s19 = int_to_ptr.vmem [resolvable:$true] %s165_s19 }
  0x2d   :  { %vm359_vm0 = vcmp.eq.s32.totalorder %v55_v6, 0  ;;  %vm372_vm1 = vcmp.eq.s32.totalorder %v67_v20, 0  ;;  %vm385_vm2 = vcmp.eq.s32.totalorder %v79_v34, 0  ;;  %vm402_vm3 = vcmp.eq.s32.totalorder %v91_v48, 0  ;;  %p242_p2 = scmp.ne.s32.totalorder %s154_s17, %s241_s20  ;;  %p246_p3 = scmp.lt.s32.totalorder %s154_s17, %s154_s17 }
  0x2e   :  { %p247_p4 = scmp.lt.s32.totalorder %s241_s20, %s241_s20 }
  0x30   :  { %108 = vrot.lane.b32.xlu1 %v105_v2, %s298_s11  ;;  %106 = vrot.lane.b32.xlu0 %v104_v3, %s298_s11  ;;  %p248_p5 = por %p247_p4, %p246_p3 }
  0x32   :  { %p249_p6 = pnand %p248_p5, %p242_p2 }
  0x34   :  { %112 = vrot.lane.b32.xlu1 %v105_v2, %s297_s10  ;;  %110 = vrot.lane.b32.xlu0 %v104_v3, %s297_s10 }
  0x9a   :  { %v52_v8 = vpop.permute.xlu1 %51  ;;  %v48_v9 = vpop.permute.xlu0 %47 }
  0x9b   :  { %v57_v10 = vsel %vm359_vm0, %v48_v9, %v52_v8 }
  0x9c   :  { %59 = vrot.lane.b32.xlu0 %v57_v10, %s299_s1 }
  0x9e   :  { %v54_v11 = vpop.permute.xlu1 %53  ;;  %v50_v12 = vpop.permute.xlu0 %49 }
  0x9f   :  { %v58_v13 = vsel %vm359_vm0, %v50_v12, %v54_v11 }
  0xa0   :  { %63 = vrot.lane.b32.xlu0 %v57_v10, %s300_s12  ;;  %61 = vrot.lane.b32.xlu1 %v58_v13, %s299_s1 }
  0xa2   :  { %v109_v14 = vpop.permute.xlu1 %108  ;;  %v107_v15 = vpop.permute.xlu0 %106 }
  0xa4   :  { %65 = vrot.lane.b32.xlu1 %v58_v13, %s300_s12 }
  0xa6   :  { %v113_v16 = vpop.permute.xlu1 %112  ;;  %v111_v17 = vpop.permute.xlu0 %110 }
  0xa7   :  { %v115_v18 = vsel %vm359_vm0, %v109_v14, %v113_v16  ;;  %v114_v19 = vsel %vm359_vm0, %v107_v15, %v111_v17 }
  0xa8   :  { %118 = vrot.lane.b32.xlu1 %v115_v18, %s299_s1  ;;  %116 = vrot.lane.b32.xlu0 %v114_v19, %s299_s1 }
  0xac   :  { %122 = vrot.lane.b32.xlu1 %v115_v18, %s300_s12  ;;  %120 = vrot.lane.b32.xlu0 %v114_v19, %s300_s12 }
 0x10e   :  { %v60_v21 = vpop.permute.xlu0 %59 }
 0x112   :  { %v62_v23 = vpop.permute.xlu1 %61  ;;  %v64_v24 = vpop.permute.xlu0 %63 }
 0x113   :  { %v69_v25 = vsel %vm372_vm1, %v60_v21, %v64_v24 }
 0x114   :  { %71 = vrot.lane.b32.xlu0 %v69_v25, %s301_s13 }
 0x116   :  { %v66_v26 = vpop.permute.xlu1 %65 }
 0x117   :  { %v70_v27 = vsel %vm372_vm1, %v62_v23, %v66_v26 }
 0x118   :  { %73 = vrot.lane.b32.xlu1 %v70_v27, %s301_s13  ;;  %75 = vrot.lane.b32.xlu0 %v69_v25, %s302_s14 }
 0x11a   :  { %v119_v28 = vpop.permute.xlu1 %118  ;;  %v117_v29 = vpop.permute.xlu0 %116 }
 0x11c   :  { %77 = vrot.lane.b32.xlu1 %v70_v27, %s302_s14 }
 0x11e   :  { %v123_v30 = vpop.permute.xlu1 %122  ;;  %v121_v31 = vpop.permute.xlu0 %120 }
 0x11f   :  { %v125_v32 = vsel %vm372_vm1, %v119_v28, %v123_v30  ;;  %v124_v33 = vsel %vm372_vm1, %v117_v29, %v121_v31 }
 0x120   :  { %128 = vrot.lane.b32.xlu1 %v125_v32, %s301_s13  ;;  %126 = vrot.lane.b32.xlu0 %v124_v33, %s301_s13 }
 0x124   :  { %132 = vrot.lane.b32.xlu1 %v125_v32, %s302_s14  ;;  %130 = vrot.lane.b32.xlu0 %v124_v33, %s302_s14 }
 0x186   :  { %v72_v35 = vpop.permute.xlu0 %71 }
 0x18a   :  { %v74_v37 = vpop.permute.xlu1 %73  ;;  %v76_v38 = vpop.permute.xlu0 %75 }
 0x18b   :  { %v81_v39 = vsel %vm385_vm2, %v72_v35, %v76_v38 }
 0x18c   :  { %83 = vrot.lane.b32.xlu0 %v81_v39, %s303_s15 }
 0x18e   :  { %v78_v40 = vpop.permute.xlu1 %77 }
 0x18f   :  { %v82_v41 = vsel %vm385_vm2, %v74_v37, %v78_v40 }
 0x190   :  { %85 = vrot.lane.b32.xlu1 %v82_v41, %s303_s15  ;;  %87 = vrot.lane.b32.xlu0 %v81_v39, %s295_s23 }
 0x192   :  { %v129_v42 = vpop.permute.xlu1 %128  ;;  %v127_v43 = vpop.permute.xlu0 %126 }
 0x194   :  { %89 = vrot.lane.b32.xlu1 %v82_v41, %s295_s23 }
 0x196   :  { %v133_v44 = vpop.permute.xlu1 %132  ;;  %v131_v45 = vpop.permute.xlu0 %130 }
 0x197   :  { %v135_v46 = vsel %vm385_vm2, %v129_v42, %v133_v44  ;;  %v134_v47 = vsel %vm385_vm2, %v127_v43, %v131_v45 }
 0x198   :  { %138 = vrot.lane.b32.xlu1 %v135_v46, %s303_s15  ;;  %136 = vrot.lane.b32.xlu0 %v134_v47, %s303_s15 }
 0x19c   :  { %142 = vrot.lane.b32.xlu1 %v135_v46, %s295_s23  ;;  %140 = vrot.lane.b32.xlu0 %v134_v47, %s295_s23 }
 0x1fe   :  { %v84_v49 = vpop.permute.xlu0 %83 }
 0x202   :  { %v86_v51 = vpop.permute.xlu1 %85  ;;  %v88_v52 = vpop.permute.xlu0 %87 }
 0x203   :  { %v93_v53 = vsel %vm402_vm3, %v84_v49, %v88_v52 }
 0x204   :  { %v95_v54 = vmul.f32 255.0, %v93_v53 }
 0x206   :  { %v182_v55 = vround.rtne.f32 %v95_v54  ;;  %v90_v56 = vpop.permute.xlu1 %89 }
 0x207   :  { %v94_v57 = vsel %vm402_vm3, %v86_v51, %v90_v56 }
 0x208   :  { %v100_v58 = vmul.f32 0.003921569, %v182_v55  ;;  %v96_v59 = vmul.f32 255.0, %v94_v57 }
 0x20a   :  { %102 = vst [vmem:[#allocation7] sm:$0xff] %v100_v58  ;;  %v183_v60 = vround.rtne.f32 %v96_v59  ;;  %v139_v61 = vpop.permute.xlu1 %138  ;;  %v137_v62 = vpop.permute.xlu0 %136 }
 0x20c   :  { %v101_v63 = vmul.f32 0.003921569, %v183_v60 }
 0x20e   :  { %103 = vst [vmem:[#allocation7 + $0x8] sm:$0xff] %v101_v63  ;;  %v143_v0 = vpop.permute.xlu1 %142  ;;  %v141_v1 = vpop.permute.xlu0 %140 }
 0x20f   :  { %v145_v2 = vsel %vm402_vm3, %v139_v61, %v143_v0  ;;  %v144_v3 = vsel %vm402_vm3, %v137_v62, %v141_v1 }
 0x210   :  { %252 = shalt.err (!%p249_p6)
}
 0x211   :  { %s253_s25 = scalar_lea.hbm %s453_s2, 256 }
 0x212   :  { %p254_p7 = scmp.ne.s32.totalorder %s453_s2, %s253_s25  ;;  %p257_p8 = scmp.lt.u32.totalorder %s253_s25, %s453_s2 }
 0x214   :  { %p259_p9 = pnand %p257_p8, %p254_p7 }
 0x216   :  { %262 = shalt.err (!%p259_p9)
}
 0x217   :  { %159 = dma.vmem_to_hbm [thread:$0]  %s154_s17, 256, %s453_s2, [#allocation4], %s294_s22, %s294_s22, %s295_s23   ;;  %147 = vst [vmem:[#allocation8 + $0x8] sm:$0xff] %v145_v2  ;;  %146 = vst [vmem:[#allocation8] sm:$0xff] %v144_v3 }
 0x218   :  { %s263_s5 = scalar_lea.vmem %s410_s19, 256  ;;  %p268_p11 = scmp.lt.s32.totalorder %s410_s19, %s410_s19 }
 0x219   :  { %p264_p10 = scmp.ne.s32.totalorder %s410_s19, %s263_s5  ;;  %p269_p12 = scmp.lt.s32.totalorder %s263_s5, %s263_s5 }
 0x21b   :  { %p270_p13 = por %p269_p12, %p268_p11 }
 0x21d   :  { %p271_p0 = pnand %p270_p13, %p264_p10 }
 0x21f   :  { %274 = shalt.err (!%p271_p0)
}
 0x220   :  { %s275_s8 = scalar_lea.hbm %s454_s3, 256 }
 0x221   :  { %p276_p1 = scmp.ne.s32.totalorder %s454_s3, %s275_s8  ;;  %p279_p2 = scmp.lt.u32.totalorder %s275_s8, %s454_s3 }
 0x223   :  { %p281_p3 = pnand %p279_p2, %p276_p1 }
 0x225   :  { %284 = shalt.err (!%p281_p3)
}
 0x226   :  { %171 = dma.vmem_to_hbm [thread:$0]  %s410_s19, 256, %s454_s3, [#allocation9], %s294_s22, %s294_s22, %s295_s23  }
 0x227   :  { %289 = dma.done.wait [#allocation4], 256  }
 0x228   :  { %290 = vsyncadd [#allocation4], 4294967040 }
 0x229   :  { %291 = dma.done.wait [#allocation9], 256  }
 0x22a   :  { %292 = vsyncadd [#allocation9], 4294967040 }
 0x22b   :  { %178 = vsyncpa [#allocation3], 1 }
 0x22c   :  { %179 = vsyncpa [#allocation6], 1 }
 0x22d   :  { %180 = vsyncpa [#allocation4], 1 }
 0x22e   :  { %181 = vsyncpa [#allocation9], 1 }

</bundles_post_ra>
